<compile_context>
chip_gen: v6e
topology: v6e:2x2x1
jax: 0.10.0
libtpu: 0.0.40
codegen_flags: <defaults>
</compile_context>

<pallas_src>
import jax
import jax.numpy as jnp
import numpy as np
from jax.experimental import pallas as pl
from jax.experimental.pallas import tpu as pltpu

PERIODS = 8


# ----------------------------------------------------------------------------
# Pallas kernel: the entire A3T-GCN forward in one invocation.
# All tensors are period-batched in the lane dimension:
#   x_nt : (N, P*Fin)   lane index = p*Fin + f
#   h    : (N, P*C)     lane index = p*C + c
# ----------------------------------------------------------------------------
def a3tgcn_kernel(
    x_nt_ref,       # (N, P*Fin)      X, period-in-lanes layout
    op_ref,         # (2N, N)         [S ; A_hat] stacked operators
    wc0_ref,        # (P*Fin, P*C)    block-diag ChebConv W0
    wc1_ref,        # (P*Fin, P*C)    block-diag ChebConv W1
    wz_ref,         # (P*Fin, P*C)    block-diag folded update-gate weight
    wr_ref,         # (P*Fin, P*C)    block-diag folded reset-gate weight
    wh_ref,         # (P*Fin, P*C)    block-diag folded candidate weight
    wzl_h_ref,      # (P*C, P*C)      block-diag Linear hidden-part (update)
    wrl_h_ref,      # (P*C, P*C)      block-diag Linear hidden-part (reset)
    whl_h_ref,      # (P*C, P*C)      block-diag Linear hidden-part (candidate)
    bias_ref,       # (4, P*C)        rows: bc, bz_eff, br_eff, bh_eff (tiled)
    acc_ref,        # (P*C, C)        attention-weighted period-sum matrix
    out_ref,        # (N, C)          H_accum
):
    n = out_ref.shape[0]

    x_nt = x_nt_ref[...]                                              # (N, P*Fin)

    # S @ X_p and A_hat @ X_p for every period in a single matmul.
    opx = jnp.dot(op_ref[...], x_nt, preferred_element_type=jnp.float32)  # (2N, P*Fin)
    sx = opx[:n]                                                      # (N, P*Fin)
    ax = opx[n:]                                                      # (N, P*Fin)

    b = bias_ref[...]                                                 # (4, P*C)
    bc, bz, br, bh = b[0:1, :], b[1:2, :], b[2:3, :], b[3:4, :]

    # ChebConv K=2 (all periods at once):  h = X W0 + (S X) W1 + bc
    h = (jnp.dot(x_nt, wc0_ref[...], preferred_element_type=jnp.float32)
         + jnp.dot(sx, wc1_ref[...], preferred_element_type=jnp.float32)
         + bc)                                                        # (N, P*C)

    # TGCN GRU gates (GCNConv weight folded into the Linear x-part).
    z = jax.nn.sigmoid(
        jnp.dot(ax, wz_ref[...], preferred_element_type=jnp.float32)
        + jnp.dot(h, wzl_h_ref[...], preferred_element_type=jnp.float32)
        + bz)
    r = jax.nn.sigmoid(
        jnp.dot(ax, wr_ref[...], preferred_element_type=jnp.float32)
        + jnp.dot(h, wrl_h_ref[...], preferred_element_type=jnp.float32)
        + br)
    h_tilde = jnp.tanh(
        jnp.dot(ax, wh_ref[...], preferred_element_type=jnp.float32)
        + jnp.dot(h * r, whl_h_ref[...], preferred_element_type=jnp.float32)
        + bh)
    h_new = z * h + (1.0 - z) * h_tilde                               # (N, P*C)

    # Attention-weighted sum over periods as one matmul; single lane store.
    out_ref[...] = jnp.dot(h_new, acc_ref[...],
                           preferred_element_type=jnp.float32)        # (N, C)


# ----------------------------------------------------------------------------
# Wrapper: static weight folding / block-diag expansion + pallas_call.
# ----------------------------------------------------------------------------
def a3tgcn_forward(X_pnf, probs, A_hat, S, params):
    """X_pnf: [periods, N, F_in] float32.  Returns H_accum [N, out_channels]."""
    P, N, Fin = X_pnf.shape
    C = params["wc0"].shape[1]

    # --- fold GCNConv gate weight into the Linear x-part (static, f32) ------
    wz_eff = params["wzg"] @ params["wzl_x"]
    wr_eff = params["wrg"] @ params["wrl_x"]
    wh_eff = params["whg"] @ params["whl_x"]
    bz_eff = params["bzg"] @ params["wzl_x"] + params["bzl"]
    br_eff = params["brg"] @ params["wrl_x"] + params["brl"]
    bh_eff = params["bhg"] @ params["whl_x"] + params["bhl"]

    # --- block-diagonal expansion over periods (wrapper-side, static) -------
    def bdiag(w):
        k, c = w.shape
        return (jnp.eye(P, dtype=w.dtype)[:, None, :, None]
                * w[None, :, None, :]).reshape(P * k, P * c)

    wc0_blk = bdiag(params["wc0"])
    wc1_blk = bdiag(params["wc1"])
    wz_blk = bdiag(wz_eff)
    wr_blk = bdiag(wr_eff)
    wh_blk = bdiag(wh_eff)
    wzl_h_blk = bdiag(params["wzl_h"])
    wrl_h_blk = bdiag(params["wrl_h"])
    whl_h_blk = bdiag(params["whl_h"])

    # --- packed biases (tiled per period along lanes) ------------------------
    bias = jnp.concatenate(
        [jnp.tile(params["bc"], (1, P)),
         jnp.tile(bz_eff, (1, P)),
         jnp.tile(br_eff, (1, P)),
         jnp.tile(bh_eff, (1, P))], axis=0)                    # (4, P*C)

    # --- attention-weighted period-sum matrix --------------------------------
    acc_mat = (probs[:, None, None]
               * jnp.eye(C, dtype=jnp.float32)[None]).reshape(P * C, C)

    # --- stacked graph operators & period-in-lanes X -------------------------
    op = jnp.concatenate([S, A_hat], axis=0)                   # (2N, N)
    x_nt = jnp.transpose(X_pnf, (1, 0, 2)).reshape(N, P * Fin)  # (N, P*Fin)

    def full(shape):
        return pl.BlockSpec(shape, lambda i, _s=shape: (0,) * len(_s))

    in_specs = [
        full((N, P * Fin)),                                    # x_nt
        full((2 * N, N)),                                      # [S; A_hat]
        full((P * Fin, P * C)), full((P * Fin, P * C)),        # Cheb W0/W1
        full((P * Fin, P * C)), full((P * Fin, P * C)),        # folded z/r
        full((P * Fin, P * C)),                                # folded h
        full((P * C, P * C)), full((P * C, P * C)),            # Linear hidden z/r
        full((P * C, P * C)),                                  # Linear hidden h
        full((4, P * C)),                                      # packed biases
        full((P * C, C)),                                      # acc matrix
    ]

    return pl.pallas_call(
        a3tgcn_kernel,
        out_shape=jax.ShapeDtypeStruct((N, C), jnp.float32),
        grid=(1,),
        in_specs=in_specs,
        out_specs=pl.BlockSpec((N, C), lambda i: (0, 0)),
        compiler_params=pltpu.CompilerParams(
            dimension_semantics=("arbitrary",)),
    )(x_nt, op, wc0_blk, wc1_blk, wz_blk, wr_blk, wh_blk,
      wzl_h_blk, wrl_h_blk, whl_h_blk, bias, acc_mat)


# ----------------------------------------------------------------------------
# Pure-JAX reference (original unfolded per-period math), for correctness.
# ----------------------------------------------------------------------------
def a3tgcn_reference(X_pnf, probs, A_hat, S, params):
    H_accum = 0.0
    for p in range(X_pnf.shape[0]):
        x = X_pnf[p]
        h = x @ params["wc0"] + (S @ x) @ params["wc1"] + params["bc"]
        ax = A_hat @ x
        conv_z = ax @ params["wzg"] + params["bzg"]
        conv_r = ax @ params["wrg"] + params["brg"]
        conv_h = ax @ params["whg"] + params["bhg"]
        z = jax.nn.sigmoid(conv_z @ params["wzl_x"] + h @ params["wzl_h"] + params["bzl"])
        r = jax.nn.sigmoid(conv_r @ params["wrl_x"] + h @ params["wrl_h"] + params["brl"])
        h_tilde = jnp.tanh(conv_h @ params["whl_x"] + (h * r) @ params["whl_h"] + params["bhl"])
        h_new = z * h + (1.0 - z) * h_tilde
        H_accum = H_accum + probs[p] * h_new
    return H_accum


# ----------------------------------------------------------------------------
# Glue: dense graph operators + deterministic parameter init.
# ----------------------------------------------------------------------------
def build_graph_operators(edge_index, edge_weight, num_nodes):
    src, dst = edge_index
    A = jnp.zeros((num_nodes, num_nodes), jnp.float32).at[dst, src].add(edge_weight)

    # GCNConv norm with self loops:  A_hat = D^-1/2 (A + I) D^-1/2
    A_tilde = A + jnp.eye(num_nodes, dtype=jnp.float32)
    deg = A_tilde.sum(axis=1)
    dis = jnp.where(deg > 0, 1.0 / jnp.sqrt(deg), 0.0)
    A_hat = dis[:, None] * A_tilde * dis[None, :]

    # ChebConv (sym norm, lambda_max=2):  L_hat = L - I = -D^-1/2 A D^-1/2
    deg_c = A.sum(axis=1)
    dic = jnp.where(deg_c > 0, 1.0 / jnp.sqrt(deg_c), 0.0)
    S = -(dic[:, None] * A * dic[None, :])
    return A_hat, S


def init_params(key, in_channels, out_channels):
    ks = jax.random.split(key, 20)

    def w(k, shape, scale=0.2):
        return (scale * jax.random.normal(k, shape)).astype(jnp.float32)

    C = out_channels
    return {
        # ChebConv K=2
        "wc0": w(ks[0], (in_channels, C)), "wc1": w(ks[1], (in_channels, C)),
        "bc": w(ks[2], (1, C)),
        # GCNConv gates
        "wzg": w(ks[3], (in_channels, C)), "bzg": w(ks[4], (1, C)),
        "wrg": w(ks[5], (in_channels, C)), "brg": w(ks[6], (1, C)),
        "whg": w(ks[7], (in_channels, C)), "bhg": w(ks[8], (1, C)),
        # Linear(2C, C) per gate, split into [conv-part, hidden-part]
        "wzl_x": w(ks[9], (C, C)), "wzl_h": w(ks[10], (C, C)), "bzl": w(ks[11], (1, C)),
        "wrl_x": w(ks[12], (C, C)), "wrl_h": w(ks[13], (C, C)), "brl": w(ks[14], (1, C)),
        "whl_x": w(ks[15], (C, C)), "whl_h": w(ks[16], (C, C)), "bhl": w(ks[17], (1, C)),
        # attention parameter (torch.nn.init.uniform_ -> U[0,1))
        "attention": jax.random.uniform(ks[18], (PERIODS,), jnp.float32),
    }


if __name__ == "__main__":
    N, F_IN, F_OUT = 16, 4, 8
    key = jax.random.PRNGKey(0)
    k_x, k_w, k_ew = jax.random.split(key, 3)

    # X as the PyTorch module expects: [num_nodes, in_channels, periods]
    X = jax.random.normal(k_x, (N, F_IN, PERIODS), jnp.float32)

    # simple symmetric ring graph (deterministic)
    src = np.concatenate([np.arange(N), (np.arange(N) + 1) % N])
    dst = np.concatenate([(np.arange(N) + 1) % N, np.arange(N)])
    edge_index = jnp.asarray(np.stack([src, dst]), jnp.int32)
    edge_weight = jax.random.uniform(k_ew, (edge_index.shape[1],), jnp.float32,
                                     minval=0.5, maxval=1.5)

    params = init_params(k_w, F_IN, F_OUT)
    probs = jax.nn.softmax(params["attention"])           # softmax over periods
    A_hat, S = build_graph_operators(edge_index, edge_weight, N)

    X_pnf = jnp.transpose(X, (2, 0, 1))                   # [periods, N, F_in]

    out = a3tgcn_forward(X_pnf, probs, A_hat, S, params)
    out = jax.block_until_ready(out)

    ref = a3tgcn_reference(X_pnf, probs, A_hat, S, params)
    np.testing.assert_allclose(np.asarray(out), np.asarray(ref), rtol=1e-3, atol=1e-3)

    print("KERNEL_OK")
</pallas_src>

<mosaic_0001>
module attributes {stable_mosaic.version = 11 : i64} {
  func.func @a3tgcn_kernel(%arg0: i32, %arg1: memref<16x32xf32, #tpu.memory_space<vmem>>, %arg2: memref<32x16xf32, #tpu.memory_space<vmem>>, %arg3: memref<32x64xf32, #tpu.memory_space<vmem>>, %arg4: memref<32x64xf32, #tpu.memory_space<vmem>>, %arg5: memref<32x64xf32, #tpu.memory_space<vmem>>, %arg6: memref<32x64xf32, #tpu.memory_space<vmem>>, %arg7: memref<32x64xf32, #tpu.memory_space<vmem>>, %arg8: memref<64x64xf32, #tpu.memory_space<vmem>>, %arg9: memref<64x64xf32, #tpu.memory_space<vmem>>, %arg10: memref<64x64xf32, #tpu.memory_space<vmem>>, %arg11: memref<4x64xf32, #tpu.memory_space<vmem>>, %arg12: memref<64x8xf32, #tpu.memory_space<vmem>>, %arg13: memref<16x8xf32, #tpu.memory_space<vmem>>) attributes {dimension_semantics = [#tpu.dimension_semantics<arbitrary>], iteration_bounds = array<i64: 1>, scalar_prefetch = 0 : i64, scratch_operands = 0 : i64, tpu.core_type = #tpu.core_type<tc>, window_params = [{pipeline_mode = #tpu.pipeline_mode<synchronous>, transform_indices = @transform_0, window_bounds = array<i64: 16, 32>}, {pipeline_mode = #tpu.pipeline_mode<synchronous>, transform_indices = @transform_1, window_bounds = array<i64: 32, 16>}, {pipeline_mode = #tpu.pipeline_mode<synchronous>, transform_indices = @transform_2, window_bounds = array<i64: 32, 64>}, {pipeline_mode = #tpu.pipeline_mode<synchronous>, transform_indices = @transform_3, window_bounds = array<i64: 32, 64>}, {pipeline_mode = #tpu.pipeline_mode<synchronous>, transform_indices = @transform_4, window_bounds = array<i64: 32, 64>}, {pipeline_mode = #tpu.pipeline_mode<synchronous>, transform_indices = @transform_5, window_bounds = array<i64: 32, 64>}, {pipeline_mode = #tpu.pipeline_mode<synchronous>, transform_indices = @transform_6, window_bounds = array<i64: 32, 64>}, {pipeline_mode = #tpu.pipeline_mode<synchronous>, transform_indices = @transform_7, window_bounds = array<i64: 64, 64>}, {pipeline_mode = #tpu.pipeline_mode<synchronous>, transform_indices = @transform_8, window_bounds = array<i64: 64, 64>}, {pipeline_mode = #tpu.pipeline_mode<synchronous>, transform_indices = @transform_9, window_bounds = array<i64: 64, 64>}, {pipeline_mode = #tpu.pipeline_mode<synchronous>, transform_indices = @transform_10, window_bounds = array<i64: 4, 64>}, {pipeline_mode = #tpu.pipeline_mode<synchronous>, transform_indices = @transform_11, window_bounds = array<i64: 64, 8>}, {pipeline_mode = #tpu.pipeline_mode<synchronous>, transform_indices = @transform_12, window_bounds = array<i64: 16, 8>}]} {
    %c0 = arith.constant 0 : index
    %c0_0 = arith.constant 0 : index
    %0 = vector.load %arg1[%c0, %c0_0] : memref<16x32xf32, #tpu.memory_space<vmem>>, vector<16x32xf32>
    %c0_1 = arith.constant 0 : index
    %c0_2 = arith.constant 0 : index
    %1 = vector.load %arg2[%c0_1, %c0_2] : memref<32x16xf32, #tpu.memory_space<vmem>>, vector<32x16xf32>
    %cst = arith.constant dense<0.000000e+00> : vector<32x32xf32>
    %2 = tpu.matmul %1, %0, %cst {dimension_numbers = #tpu.dot_dimension_numbers<[1], [0], [0], [1], [0, 0, 1, 1], [], []>} : vector<32x16xf32>, vector<16x32xf32>, vector<32x32xf32> -> vector<32x32xf32>
    %3 = vector.extract_strided_slice %2 {offsets = [0, 0], sizes = [16, 32], strides = [1, 1]} : vector<32x32xf32> to vector<16x32xf32>
    %4 = vector.extract_strided_slice %2 {offsets = [16, 0], sizes = [16, 32], strides = [1, 1]} : vector<32x32xf32> to vector<16x32xf32>
    %c0_3 = arith.constant 0 : index
    %c0_4 = arith.constant 0 : index
    %5 = vector.load %arg11[%c0_3, %c0_4] : memref<4x64xf32, #tpu.memory_space<vmem>>, vector<4x64xf32>
    %6 = vector.extract_strided_slice %5 {offsets = [0, 0], sizes = [1, 64], strides = [1, 1]} : vector<4x64xf32> to vector<1x64xf32>
    %7 = vector.extract_strided_slice %5 {offsets = [1, 0], sizes = [1, 64], strides = [1, 1]} : vector<4x64xf32> to vector<1x64xf32>
    %8 = vector.extract_strided_slice %5 {offsets = [2, 0], sizes = [1, 64], strides = [1, 1]} : vector<4x64xf32> to vector<1x64xf32>
    %9 = vector.extract_strided_slice %5 {offsets = [3, 0], sizes = [1, 64], strides = [1, 1]} : vector<4x64xf32> to vector<1x64xf32>
    %c0_5 = arith.constant 0 : index
    %c0_6 = arith.constant 0 : index
    %10 = vector.load %arg3[%c0_5, %c0_6] : memref<32x64xf32, #tpu.memory_space<vmem>>, vector<32x64xf32>
    %cst_7 = arith.constant dense<0.000000e+00> : vector<16x64xf32>
    %11 = tpu.matmul %0, %10, %cst_7 {dimension_numbers = #tpu.dot_dimension_numbers<[1], [0], [0], [1], [0, 0, 1, 1], [], []>} : vector<16x32xf32>, vector<32x64xf32>, vector<16x64xf32> -> vector<16x64xf32>
    %c0_8 = arith.constant 0 : index
    %c0_9 = arith.constant 0 : index
    %12 = vector.load %arg4[%c0_8, %c0_9] : memref<32x64xf32, #tpu.memory_space<vmem>>, vector<32x64xf32>
    %cst_10 = arith.constant dense<0.000000e+00> : vector<16x64xf32>
    %13 = tpu.matmul %3, %12, %cst_10 {dimension_numbers = #tpu.dot_dimension_numbers<[1], [0], [0], [1], [0, 0, 1, 1], [], []>} : vector<16x32xf32>, vector<32x64xf32>, vector<16x64xf32> -> vector<16x64xf32>
    %14 = arith.addf %11, %13 : vector<16x64xf32>
    %15 = vector.broadcast %6 : vector<1x64xf32> to vector<16x64xf32>
    %16 = arith.addf %14, %15 : vector<16x64xf32>
    %c0_11 = arith.constant 0 : index
    %c0_12 = arith.constant 0 : index
    %17 = vector.load %arg5[%c0_11, %c0_12] : memref<32x64xf32, #tpu.memory_space<vmem>>, vector<32x64xf32>
    %cst_13 = arith.constant dense<0.000000e+00> : vector<16x64xf32>
    %18 = tpu.matmul %4, %17, %cst_13 {dimension_numbers = #tpu.dot_dimension_numbers<[1], [0], [0], [1], [0, 0, 1, 1], [], []>} : vector<16x32xf32>, vector<32x64xf32>, vector<16x64xf32> -> vector<16x64xf32>
    %c0_14 = arith.constant 0 : index
    %c0_15 = arith.constant 0 : index
    %19 = vector.load %arg8[%c0_14, %c0_15] : memref<64x64xf32, #tpu.memory_space<vmem>>, vector<64x64xf32>
    %cst_16 = arith.constant dense<0.000000e+00> : vector<16x64xf32>
    %20 = tpu.matmul %16, %19, %cst_16 {dimension_numbers = #tpu.dot_dimension_numbers<[1], [0], [0], [1], [0, 0, 1, 1], [], []>} : vector<16x64xf32>, vector<64x64xf32>, vector<16x64xf32> -> vector<16x64xf32>
    %21 = arith.addf %18, %20 : vector<16x64xf32>
    %22 = vector.broadcast %7 : vector<1x64xf32> to vector<16x64xf32>
    %23 = arith.addf %21, %22 : vector<16x64xf32>
    %24 = arith.negf %23 : vector<16x64xf32>
    %25 = math.exp %24 : vector<16x64xf32>
    %cst_17 = arith.constant 1.000000e+00 : f32
    %26 = vector.broadcast %cst_17 : f32 to vector<16x64xf32>
    %27 = arith.addf %26, %25 : vector<16x64xf32>
    %28 = arith.divf %26, %27 : vector<16x64xf32>
    %c0_18 = arith.constant 0 : index
    %c0_19 = arith.constant 0 : index
    %29 = vector.load %arg6[%c0_18, %c0_19] : memref<32x64xf32, #tpu.memory_space<vmem>>, vector<32x64xf32>
    %cst_20 = arith.constant dense<0.000000e+00> : vector<16x64xf32>
    %30 = tpu.matmul %4, %29, %cst_20 {dimension_numbers = #tpu.dot_dimension_numbers<[1], [0], [0], [1], [0, 0, 1, 1], [], []>} : vector<16x32xf32>, vector<32x64xf32>, vector<16x64xf32> -> vector<16x64xf32>
    %c0_21 = arith.constant 0 : index
    %c0_22 = arith.constant 0 : index
    %31 = vector.load %arg9[%c0_21, %c0_22] : memref<64x64xf32, #tpu.memory_space<vmem>>, vector<64x64xf32>
    %cst_23 = arith.constant dense<0.000000e+00> : vector<16x64xf32>
    %32 = tpu.matmul %16, %31, %cst_23 {dimension_numbers = #tpu.dot_dimension_numbers<[1], [0], [0], [1], [0, 0, 1, 1], [], []>} : vector<16x64xf32>, vector<64x64xf32>, vector<16x64xf32> -> vector<16x64xf32>
    %33 = arith.addf %30, %32 : vector<16x64xf32>
    %34 = vector.broadcast %8 : vector<1x64xf32> to vector<16x64xf32>
    %35 = arith.addf %33, %34 : vector<16x64xf32>
    %36 = arith.negf %35 : vector<16x64xf32>
    %37 = math.exp %36 : vector<16x64xf32>
    %cst_24 = arith.constant 1.000000e+00 : f32
    %38 = vector.broadcast %cst_24 : f32 to vector<16x64xf32>
    %39 = arith.addf %38, %37 : vector<16x64xf32>
    %40 = arith.divf %38, %39 : vector<16x64xf32>
    %c0_25 = arith.constant 0 : index
    %c0_26 = arith.constant 0 : index
    %41 = vector.load %arg7[%c0_25, %c0_26] : memref<32x64xf32, #tpu.memory_space<vmem>>, vector<32x64xf32>
    %cst_27 = arith.constant dense<0.000000e+00> : vector<16x64xf32>
    %42 = tpu.matmul %4, %41, %cst_27 {dimension_numbers = #tpu.dot_dimension_numbers<[1], [0], [0], [1], [0, 0, 1, 1], [], []>} : vector<16x32xf32>, vector<32x64xf32>, vector<16x64xf32> -> vector<16x64xf32>
    %43 = arith.mulf %16, %40 : vector<16x64xf32>
    %c0_28 = arith.constant 0 : index
    %c0_29 = arith.constant 0 : index
    %44 = vector.load %arg10[%c0_28, %c0_29] : memref<64x64xf32, #tpu.memory_space<vmem>>, vector<64x64xf32>
    %cst_30 = arith.constant dense<0.000000e+00> : vector<16x64xf32>
    %45 = tpu.matmul %43, %44, %cst_30 {dimension_numbers = #tpu.dot_dimension_numbers<[1], [0], [0], [1], [0, 0, 1, 1], [], []>} : vector<16x64xf32>, vector<64x64xf32>, vector<16x64xf32> -> vector<16x64xf32>
    %46 = arith.addf %42, %45 : vector<16x64xf32>
    %47 = vector.broadcast %9 : vector<1x64xf32> to vector<16x64xf32>
    %48 = arith.addf %46, %47 : vector<16x64xf32>
    %49 = math.tanh %48 : vector<16x64xf32>
    %50 = arith.mulf %28, %16 : vector<16x64xf32>
    %cst_31 = arith.constant 1.000000e+00 : f32
    %51 = vector.broadcast %cst_31 : f32 to vector<16x64xf32>
    %52 = arith.subf %51, %28 : vector<16x64xf32>
    %53 = arith.mulf %52, %49 : vector<16x64xf32>
    %54 = arith.addf %50, %53 : vector<16x64xf32>
    %c0_32 = arith.constant 0 : index
    %c0_33 = arith.constant 0 : index
    %55 = vector.load %arg12[%c0_32, %c0_33] : memref<64x8xf32, #tpu.memory_space<vmem>>, vector<64x8xf32>
    %cst_34 = arith.constant dense<0.000000e+00> : vector<16x8xf32>
    %56 = tpu.matmul %54, %55, %cst_34 {dimension_numbers = #tpu.dot_dimension_numbers<[1], [0], [0], [1], [0, 0, 1, 1], [], []>} : vector<16x64xf32>, vector<64x8xf32>, vector<16x8xf32> -> vector<16x8xf32>
    %c0_35 = arith.constant 0 : index
    %c0_36 = arith.constant 0 : index
    %57 = vector.load %arg13[%c0_35, %c0_36] : memref<16x8xf32, #tpu.memory_space<vmem>>, vector<16x8xf32>
    tpu.vector_store %arg13[%c0_35, %c0_36], %56 {strides = array<i32>} : memref<16x8xf32, #tpu.memory_space<vmem>>, vector<16x8xf32>,
    return
  }
  func.func @transform_0(%arg0: i32) -> (i32, i32) {
    %c0_i32 = arith.constant 0 : i32
    %c0_i32_0 = arith.constant 0 : i32
    %c0_i32_1 = arith.constant 0 : i32
    return %c0_i32, %c0_i32_0 : i32, i32
  }
  func.func @transform_1(%arg0: i32) -> (i32, i32) {
    %c0_i32 = arith.constant 0 : i32
    %c0_i32_0 = arith.constant 0 : i32
    %c0_i32_1 = arith.constant 0 : i32
    return %c0_i32, %c0_i32_0 : i32, i32
  }
  func.func @transform_2(%arg0: i32) -> (i32, i32) {
    %c0_i32 = arith.constant 0 : i32
    %c0_i32_0 = arith.constant 0 : i32
    %c0_i32_1 = arith.constant 0 : i32
    return %c0_i32, %c0_i32_0 : i32, i32
  }
  func.func @transform_3(%arg0: i32) -> (i32, i32) {
    %c0_i32 = arith.constant 0 : i32
    %c0_i32_0 = arith.constant 0 : i32
    %c0_i32_1 = arith.constant 0 : i32
    return %c0_i32, %c0_i32_0 : i32, i32
  }
  func.func @transform_4(%arg0: i32) -> (i32, i32) {
    %c0_i32 = arith.constant 0 : i32
    %c0_i32_0 = arith.constant 0 : i32
    %c0_i32_1 = arith.constant 0 : i32
    return %c0_i32, %c0_i32_0 : i32, i32
  }
  func.func @transform_5(%arg0: i32) -> (i32, i32) {
    %c0_i32 = arith.constant 0 : i32
    %c0_i32_0 = arith.constant 0 : i32
    %c0_i32_1 = arith.constant 0 : i32
    return %c0_i32, %c0_i32_0 : i32, i32
  }
  func.func @transform_6(%arg0: i32) -> (i32, i32) {
    %c0_i32 = arith.constant 0 : i32
    %c0_i32_0 = arith.constant 0 : i32
    %c0_i32_1 = arith.constant 0 : i32
    return %c0_i32, %c0_i32_0 : i32, i32
  }
  func.func @transform_7(%arg0: i32) -> (i32, i32) {
    %c0_i32 = arith.constant 0 : i32
    %c0_i32_0 = arith.constant 0 : i32
    %c0_i32_1 = arith.constant 0 : i32
    return %c0_i32, %c0_i32_0 : i32, i32
  }
  func.func @transform_8(%arg0: i32) -> (i32, i32) {
    %c0_i32 = arith.constant 0 : i32
    %c0_i32_0 = arith.constant 0 : i32
    %c0_i32_1 = arith.constant 0 : i32
    return %c0_i32, %c0_i32_0 : i32, i32
  }
  func.func @transform_9(%arg0: i32) -> (i32, i32) {
    %c0_i32 = arith.constant 0 : i32
    %c0_i32_0 = arith.constant 0 : i32
    %c0_i32_1 = arith.constant 0 : i32
    return %c0_i32, %c0_i32_0 : i32, i32
  }
  func.func @transform_10(%arg0: i32) -> (i32, i32) {
    %c0_i32 = arith.constant 0 : i32
    %c0_i32_0 = arith.constant 0 : i32
    %c0_i32_1 = arith.constant 0 : i32
    return %c0_i32, %c0_i32_0 : i32, i32
  }
  func.func @transform_11(%arg0: i32) -> (i32, i32) {
    %c0_i32 = arith.constant 0 : i32
    %c0_i32_0 = arith.constant 0 : i32
    %c0_i32_1 = arith.constant 0 : i32
    return %c0_i32, %c0_i32_0 : i32, i32
  }
  func.func @transform_12(%arg0: i32) -> (i32, i32) {
    %c0_i32 = arith.constant 0 : i32
    %c0_i32_0 = arith.constant 0 : i32
    %c0_i32_1 = arith.constant 0 : i32
    return %c0_i32, %c0_i32_0 : i32, i32
  }
}

</mosaic_0001>

<bundles_post_ra>
// kernel: tpu_custom_call.1
= control target key start
LH: loop header
LB: loop body
LE: loop exit
PB: predicated region body
PF: predicated region fallthrough
CT: control target
= control target key end

     0   :  { %17 = vsyncpa [#allocation3], 0  ;;  %s1799_s0 = inlined_call_operand.hbm [shape: f32[16,32], index: 0, kind: input, shape index: {}]   ;;  %s1800_s1 = inlined_call_operand.vmem [shape: f32[32,16], index: 1, kind: input, shape index: {}]   ;;  %s1801_s2 = inlined_call_operand.hbm [shape: f32[32,64], index: 2, kind: input, shape index: {}]   ;;  %s1802_s3 = inlined_call_operand.hbm [shape: f32[32,64], index: 3, kind: input, shape index: {}]   ;;  %s1803_s4 = inlined_call_operand.hbm [shape: f32[32,64], index: 4, kind: input, shape index: {}]   ;;  %s1804_s5 = inlined_call_operand.hbm [shape: f32[32,64], index: 5, kind: input, shape index: {}]   ;;  %s1805_s6 = inlined_call_operand.hbm [shape: f32[32,64], index: 6, kind: input, shape index: {}]   ;;  %s1806_s7 = inlined_call_operand.vmem [shape: f32[64,64], index: 7, kind: input, shape index: {}]   ;;  %s1807_s8 = inlined_call_operand.vmem [shape: f32[64,64], index: 8, kind: input, shape index: {}]   ;;  %s1808_s9 = inlined_call_operand.hbm [shape: f32[64,64], index: 9, kind: input, shape index: {}]   ;;  %s1809_s10 = inlined_call_operand.hbm [shape: f32[4,64], index: 10, kind: input, shape index: {}]   ;;  %s1810_s11 = inlined_call_operand.vmem [shape: f32[64,8], index: 11, kind: input, shape index: {}]   ;;  %s1811_s12 = inlined_call_operand.vmem [shape: f32[16,8], index: 12, kind: output, shape index: {}]  }
   0x1   :  { %18 = vsyncpa [#allocation5], 0 }
   0x2   :  { %19 = vsyncpa [#allocation8], 0 }
   0x3   :  { %20 = vsyncpa [#allocation11], 0 }
   0x4   :  { %21 = vsyncpa [#allocation14], 0  ;;  %s1533_s21 = smov [#allocation4]   ;;  %s1534_s23 = smov [#allocation7]  }
   0x5   :  { %s41_s22 = sshll.u32 %s1533_s21, 4  ;;  %s65_s24 = sshll.u32 %s1534_s23, 4  ;;  %s42_s22 = int_to_ptr.vmem [resolvable:$true] %s41_s22  ;;  %s66_s24 = int_to_ptr.vmem [resolvable:$true] %s65_s24 }
   0x6   :  { %s1371_s25 = scalar_lea.vmem %s42_s22, 512  ;;  %p1376_p1 = scmp.lt.s32.totalorder %s42_s22, %s42_s22 }
   0x7   :  { %p1372_p0 = scmp.ne.s32.totalorder %s42_s22, %s1371_s25  ;;  %p1377_p2 = scmp.lt.s32.totalorder %s1371_s25, %s1371_s25 }
   0x9   :  { %p1378_p3 = por %p1377_p2, %p1376_p1 }
   0xb   :  { %p1379_p4 = pnand %p1378_p3, %p1372_p0 }
   0xd   :  { %1382 = shalt.err (!%p1379_p4)
}
   0xe   :  { %s1535_s26 = smov 128   ;;  %s1536_s27 = smov 8  }
   0xf   :  { %47 = dma.hbm_to_vmem [thread:$0]  %s1801_s2, 512, %s42_s22, [#allocation5], %s1535_s26, %s1535_s26, %s1536_s27  }
  0x10   :  { %s1391_s30 = scalar_lea.vmem %s66_s24, 512  ;;  %p1396_p6 = scmp.lt.s32.totalorder %s66_s24, %s66_s24 }
  0x11   :  { %p1392_p5 = scmp.ne.s32.totalorder %s66_s24, %s1391_s30  ;;  %p1397_p7 = scmp.lt.s32.totalorder %s1391_s30, %s1391_s30 }
  0x13   :  { %p1398_p8 = por %p1397_p7, %p1396_p6 }
  0x15   :  { %p1399_p9 = pnand %p1398_p8, %p1392_p5 }
  0x17   :  { %1402 = shalt.err (!%p1399_p9)
}
  0x18   :  { %71 = dma.hbm_to_vmem [thread:$0]  %s1803_s4, 512, %s66_s24, [#allocation8], %s1535_s26, %s1535_s26, %s1536_s27  }
  0x19   :  { %s1537_s15 = smov [#allocation10]   ;;  %s1538_s17 = smov [#allocation2]  }
  0x1a   :  { %s89_s16 = sshll.u32 %s1537_s15, 4  ;;  %s27_s18 = sshll.u32 %s1538_s17, 4  ;;  %s90_s16 = int_to_ptr.vmem [resolvable:$true] %s89_s16  ;;  %s28_s18 = int_to_ptr.vmem [resolvable:$true] %s27_s18 }
  0x1b   :  { %s1411_s2 = scalar_lea.vmem %s90_s16, 512  ;;  %p1416_p11 = scmp.lt.s32.totalorder %s90_s16, %s90_s16 }
  0x1c   :  { %p1412_p10 = scmp.ne.s32.totalorder %s90_s16, %s1411_s2  ;;  %p1417_p12 = scmp.lt.s32.totalorder %s1411_s2, %s1411_s2 }
  0x1e   :  { %p1418_p13 = por %p1417_p12, %p1416_p11 }
  0x20   :  { %p1419_p0 = pnand %p1418_p13, %p1412_p10 }
  0x22   :  { %1422 = shalt.err (!%p1419_p0)
}
  0x23   :  { %95 = dma.hbm_to_vmem [thread:$0]  %s1805_s6, 512, %s90_s16, [#allocation11], %s1535_s26, %s1535_s26, %s1536_s27  }
  0x24   :  { %s1431_s4 = scalar_lea.vmem %s28_s18, 256  ;;  %p1436_p2 = scmp.lt.s32.totalorder %s28_s18, %s28_s18 }
  0x25   :  { %p1432_p1 = scmp.ne.s32.totalorder %s28_s18, %s1431_s4  ;;  %p1437_p3 = scmp.lt.s32.totalorder %s1431_s4, %s1431_s4 }
  0x27   :  { %p1438_p4 = por %p1437_p3, %p1436_p2 }
  0x29   :  { %p1439_p5 = pnand %p1438_p4, %p1432_p1 }
  0x2b   :  { %1442 = shalt.err (!%p1439_p5)
}
  0x2c   :  { %33 = dma.hbm_to_vmem [thread:$0]  %s1799_s0, 256, %s28_s18, [#allocation3], %s1535_s26, %s1535_s26, %s1536_s27  }
  0x2d   :  { %s1539_s23 = smov [#allocation6]   ;;  %s1540_s25 = smov [#allocation9]  }
  0x2e   :  { %s53_s24 = sshll.u32 %s1539_s23, 4  ;;  %s77_s28 = sshll.u32 %s1540_s25, 4  ;;  %s54_s24 = int_to_ptr.vmem [resolvable:$true] %s53_s24  ;;  %s78_s28 = int_to_ptr.vmem [resolvable:$true] %s77_s28 }
  0x2f   :  { %s1451_s6 = scalar_lea.vmem %s54_s24, 512  ;;  %p1456_p7 = scmp.lt.s32.totalorder %s54_s24, %s54_s24 }
  0x30   :  { %p1452_p6 = scmp.ne.s32.totalorder %s54_s24, %s1451_s6  ;;  %p1457_p8 = scmp.lt.s32.totalorder %s1451_s6, %s1451_s6 }
  0x32   :  { %p1458_p9 = por %p1457_p8, %p1456_p7 }
  0x34   :  { %p1459_p10 = pnand %p1458_p9, %p1452_p6 }
  0x36   :  { %1462 = shalt.err (!%p1459_p10)
}
  0x37   :  { %59 = dma.hbm_to_vmem [thread:$0]  %s1802_s3, 512, %s54_s24, [#allocation5], %s1535_s26, %s1535_s26, %s1536_s27  }
  0x38   :  { %s1471_s0 = scalar_lea.vmem %s78_s28, 512  ;;  %p1476_p12 = scmp.lt.s32.totalorder %s78_s28, %s78_s28 }
  0x39   :  { %p1472_p11 = scmp.ne.s32.totalorder %s78_s28, %s1471_s0  ;;  %p1477_p13 = scmp.lt.s32.totalorder %s1471_s0, %s1471_s0 }
  0x3b   :  { %p1478_p0 = por %p1477_p13, %p1476_p12 }
  0x3d   :  { %p1479_p1 = pnand %p1478_p0, %p1472_p11 }
  0x3f   :  { %1482 = shalt.err (!%p1479_p1)
}
  0x40   :  { %83 = dma.hbm_to_vmem [thread:$0]  %s1804_s5, 512, %s78_s28, [#allocation8], %s1535_s26, %s1535_s26, %s1536_s27  }
  0x41   :  { %s1541_s15 = smov [#allocation12]   ;;  %s1542_s17 = smov [#allocation13]  }
  0x42   :  { %s105_s16 = sshll.u32 %s1541_s15, 4  ;;  %s118_s18 = sshll.u32 %s1542_s17, 4  ;;  %s106_s16 = int_to_ptr.vmem [resolvable:$true] %s105_s16  ;;  %s119_s18 = int_to_ptr.vmem [resolvable:$true] %s118_s18 }
  0x43   :  { %s1491_s3 = scalar_lea.vmem %s106_s16, 1024  ;;  %p1496_p3 = scmp.lt.s32.totalorder %s106_s16, %s106_s16 }
  0x44   :  { %p1492_p2 = scmp.ne.s32.totalorder %s106_s16, %s1491_s3  ;;  %p1497_p4 = scmp.lt.s32.totalorder %s1491_s3, %s1491_s3 }
  0x46   :  { %p1498_p5 = por %p1497_p4, %p1496_p3 }
  0x48   :  { %p1499_p6 = pnand %p1498_p5, %p1492_p2 }
  0x4a   :  { %1502 = shalt.err (!%p1499_p6)
}
  0x4b   :  { %111 = dma.hbm_to_vmem [thread:$0]  %s1808_s9, 1024, %s106_s16, [#allocation11], %s1535_s26, %s1535_s26, %s1536_s27  }
  0x4c   :  { %s1511_s5 = scalar_lea.vmem %s119_s18, 64  ;;  %p1516_p8 = scmp.lt.s32.totalorder %s119_s18, %s119_s18 }
  0x4d   :  { %p1512_p7 = scmp.ne.s32.totalorder %s119_s18, %s1511_s5  ;;  %p1517_p9 = scmp.lt.s32.totalorder %s1511_s5, %s1511_s5 }
  0x4f   :  { %p1518_p10 = por %p1517_p9, %p1516_p8 }
  0x51   :  { %p1519_p11 = pnand %p1518_p10, %p1512_p7 }
  0x53   :  { %1522 = shalt.err (!%p1519_p11)
}
  0x54   :  { %121 = dma.hbm_to_vmem [thread:$0]  %s1809_s10, 64, %s119_s18, [#allocation14]  }
  0x55   :  { %1523 = dma.done.wait [#allocation3], 256  }
  0x56   :  { %1524 = vsyncadd [#allocation3], 4294967040 }
  0x57   :  { %1525 = dma.done.wait [#allocation5], 1024  }
  0x58   :  { %1526 = vsyncadd [#allocation5], 4294966272 }
  0x59   :  { %1527 = dma.done.wait [#allocation8], 1024  }
  0x5a   :  { %1528 = vsyncadd [#allocation8], 4294966272 }
  0x5b   :  { %1529 = dma.done.wait [#allocation11], 1536  }
  0x5c   :  { %1530 = vsyncadd [#allocation11], 4294965760 }
  0x5d   :  { %1531 = dma.done.wait [#allocation14], 64  }
  0x5e   :  { %1532 = vsyncadd [#allocation14], 4294967232  ;;  %vm154_vm0 = vcmask 130048   ;;  %v149_v0 = vld [vmem:[#allocation2 + $0x8] sm:$0xff]  ;;  %v148_v1 = vld [vmem:[#allocation2] sm:$0xff]  ;;  %vm261_vm1 = vcmask 261120   ;;  %v424_v40 = vlaneseq }
  0x5f   :  { %v150_v2 = vld [vmem:[%s1800_s1] sm:$0xff]  ;;  %1192 = vmatprep.subr.mxu1 %v149_v0  ;;  %v151_v3 = vld [vmem:[%s1800_s1 + $0x8] sm:$0xff]  ;;  %v152_v6 = vld [vmem:[%s1800_s1 + $0x10] sm:$0xff]  ;;  %1221 = vmatprep.mubr.msk.f32.mxu0 %vm261_vm1, %v148_v1  ;;  %vm442_vm2 = vcmask 523264   ;;  %vm1078_vm3 = vcmask 64512  }
  0x60   :  { %1196 = vmatprep.mubr.msk.f32.mxu1 %vm154_vm0, %v150_v2  ;;  %1193 = vmatpush3.msra.mxu1 %v149_v0  ;;  %v256_v4 = vld [vmem:[#allocation4 + $0x18] sm:$0xff]  ;;  %v255_v7 = vld [vmem:[#allocation4 + $0x10] sm:$0xff]  ;;  %v153_v9 = vld [vmem:[%s1800_s1 + $0x18] sm:$0xff]  ;;  %v1729_v41 = vshrl.u32 %v424_v40, 7 }
  0x61   :  { %v260_v5 = vld [vmem:[#allocation6 + $0x18] sm:$0xff]  ;;  %1194 = vmatprep.subr.mxu1 %v148_v1  ;;  %1213 = vmatprep.subr.mxu0 %v256_v4  ;;  %v259_v8 = vld [vmem:[#allocation6 + $0x10] sm:$0xff]  ;;  %v254_v10 = vld [vmem:[#allocation4 + $0x8] sm:$0xff] }
  0x62   :  { %1195 = vmatpush3.msra.mxu1 %v148_v1  ;;  %1214 = vmatpush3.msra.mxu0 %v256_v4  ;;  %v258_v11 = vld [vmem:[#allocation6 + $0x8] sm:$0xff]  ;;  %v253_v12 = vld [vmem:[#allocation4] sm:$0xff]  ;;  %v433_v14 = vld [vmem:[#allocation7 + $0x18] sm:$0xff]  ;;  %v426_v43 = vsub.s32 0, %v1729_v41 }
  0x63   :  { %1197 = vmatmul.mubr.msk.f32.vlgmr.msra.gmra.mxu1 %vm154_vm0, %v151_v3  ;;  %1202 = vmatprep.subr.mxu1 %v260_v5  ;;  %v257_v13 = vld [vmem:[#allocation6] sm:$0xff]  ;;  %v432_v15 = vld [vmem:[#allocation7 + $0x10] sm:$0xff]  ;;  %v431_v16 = vld [vmem:[#allocation7 + $0x8] sm:$0xff] }
  0x64   :  { %1199 = vmatprep.mubr.msk.f32.mxu1 %vm154_vm0, %v152_v6  ;;  %1203 = vmatpush3.msra.mxu1 %v260_v5  ;;  %v441_v17 = vld [vmem:[%s1806_s7 + $0x38] sm:$0xff]  ;;  %v430_v18 = vld [vmem:[#allocation7] sm:$0xff]  ;;  %v439_v24 = vld [vmem:[%s1806_s7 + $0x28] sm:$0xff] }
  0x65   :  { %1215 = vmatprep.subr.mxu0 %v255_v7  ;;  %1204 = vmatprep.subr.mxu1 %v259_v8  ;;  %v634_v19 = vld [vmem:[%s1807_s8 + $0x38] sm:$0xff]  ;;  %v440_v22 = vld [vmem:[%s1806_s7 + $0x30] sm:$0xff]  ;;  %v438_v27 = vld [vmem:[%s1806_s7 + $0x20] sm:$0xff] }
  0x66   :  { %1216 = vmatpush3.msra.mxu0 %v255_v7  ;;  %1205 = vmatpush3.msra.mxu1 %v259_v8  ;;  %v633_v26 = vld [vmem:[%s1807_s8 + $0x30] sm:$0xff]  ;;  %v632_v28 = vld [vmem:[%s1807_s8 + $0x28] sm:$0xff]  ;;  %v437_v29 = vld [vmem:[%s1806_s7 + $0x18] sm:$0xff]  ;;  %v787_v8 = vsub.s32 2, %v1729_v41 }
  0x67   :  { %1200 = vmatmul.mubr.msk.f32.gmra.mxu1 %vm154_vm0, %v153_v9  ;;  %1217 = vmatprep.subr.mxu0 %v254_v10  ;;  %v631_v30 = vld [vmem:[%s1807_s8 + $0x20] sm:$0xff]  ;;  %v630_v31 = vld [vmem:[%s1807_s8 + $0x18] sm:$0xff]  ;;  %v436_v32 = vld [vmem:[%s1806_s7 + $0x10] sm:$0xff] }
  0x68   :  { %1206 = vmatprep.subr.mxu1 %v258_v11  ;;  %1218 = vmatpush3.msra.mxu0 %v254_v10  ;;  %v629_v33 = vld [vmem:[%s1807_s8 + $0x10] sm:$0xff]  ;;  %v435_v34 = vld [vmem:[%s1806_s7 + $0x8] sm:$0xff]  ;;  %v434_v36 = vld [vmem:[%s1806_s7] sm:$0xff] }
  0x69   :  { %1207 = vmatpush3.msra.mxu1 %v258_v11  ;;  %1219 = vmatprep.subr.mxu0 %v253_v12  ;;  %v628_v35 = vld [vmem:[%s1807_s8 + $0x8] sm:$0xff]  ;;  %v627_v37 = vld [vmem:[%s1807_s8] sm:$0xff]  ;;  %v1732_v44 = vld [vmem:[#allocation13] sm:$0xf] }
  0x6a   :  { %1208 = vmatprep.subr.mxu1 %v257_v13  ;;  %1220 = vmatpush3.msra.mxu0 %v253_v12  ;;  %v626_v38 = vld [vmem:[#allocation9 + $0x18] sm:$0xff]  ;;  %v427_v47 = vrot.slane %v1732_v44, %v426_v43  ;;  %v625_v53 = vld [vmem:[#allocation9 + $0x10] sm:$0xff]  ;;  %v624_v55 = vld [vmem:[#allocation9 + $0x8] sm:$0xff]  ;;  %v788_v10 = vrot.slane %v1732_v44, %v787_v8 }
  0x6b   :  { %1209 = vmatpush3.msra.mxu1 %v257_v13  ;;  %1222 = vmatmul.mubr.msk.f32.vlgmr.msra.gmra.mxu0 %vm261_vm1, %v149_v0  ;;  %v806_v39 = vld [vmem:[#allocation10 + $0x18] sm:$0xff]  ;;  %v805_v54 = vld [vmem:[#allocation10 + $0x10] sm:$0xff]  ;;  %v804_v56 = vld [vmem:[#allocation10 + $0x8] sm:$0xff] }
  0x6c   :  { %1243 = vmatprep.subr.mxu0 %v433_v14  ;;  %1224 = vmatprep.subr.mxu1 %v441_v17  ;;  %v623_v57 = vld [vmem:[#allocation9] sm:$0xff]  ;;  %v816_v59 = vld [vmem:[#allocation12 + $0x38] sm:$0xff]  ;;  %v815_v60 = vld [vmem:[#allocation12 + $0x30] sm:$0xff] }
  0x6d   :  { %1244 = vmatpush3.msra.mxu0 %v433_v14  ;;  %v803_v58 = vld [vmem:[#allocation10] sm:$0xff]  ;;  %v814_v61 = vld [vmem:[#allocation12 + $0x28] sm:$0xff]  ;;  %v812_v63 = vld [vmem:[#allocation12 + $0x18] sm:$0xff] }
  0x6e   :  { %1245 = vmatprep.subr.mxu0 %v432_v15  ;;  %v813_v62 = vld [vmem:[#allocation12 + $0x20] sm:$0xff]  ;;  %v811_v0 = vld [vmem:[#allocation12 + $0x10] sm:$0xff]  ;;  %v810_v1 = vld [vmem:[#allocation12 + $0x8] sm:$0xff] }
  0x6f   :  { %1246 = vmatpush3.msra.mxu0 %v432_v15  ;;  %v809_v2 = vld [vmem:[#allocation12] sm:$0xff] }
  0x70   :  { %1247 = vmatprep.subr.mxu0 %v431_v16 }
  0x71   :  { %1248 = vmatpush3.msra.mxu0 %v431_v16 }
  0x72   :  { %1249 = vmatprep.subr.mxu0 %v430_v18 }
  0x73   :  { %1250 = vmatpush3.msra.mxu0 %v430_v18 }
  0x74   :  { %1254 = vmatprep.subr.mxu0 %v634_v19 }
 0x123   :  { %v1198_v20 = vpop.f32.mrf.mxu1 }
 0x125   :  { %v233_v21 = vpop.f32.mrf.mxu1 }
 0x126   :  { %1210 = vmatprep.mubr.msk.f32.mxu1 %vm261_vm1, %v233_v21 }
 0x127   :  { %1211 = vmatmul.mubr.msk.f32.vlgmr.msra.gmra.mxu1 %vm261_vm1, %v1198_v20  ;;  %v1682_v23 = vpop.f32.mrf.mxu1 }
 0x128   :  { %1225 = vmatpush3.msra.mxu1 %v441_v17 }
 0x129   :  { %v1687_v25 = vpop.f32.mrf.mxu1  ;;  %1226 = vmatprep.subr.mxu1 %v440_v22 }
 0x12a   :  { %1251 = vmatprep.mubr.msk.f32.mxu0 %vm261_vm1, %v1687_v25  ;;  %1227 = vmatpush3.msra.mxu1 %v440_v22 }
 0x12b   :  { %1252 = vmatmul.mubr.msk.f32.vlgmr.msra.gmra.mxu0 %vm261_vm1, %v1682_v23  ;;  %1228 = vmatprep.subr.mxu1 %v439_v24  ;;  %v1223_v42 = vpop.f32.mrf.mxu0 }
 0x12c   :  { %1255 = vmatpush3.msra.mxu0 %v634_v19  ;;  %1229 = vmatpush3.msra.mxu1 %v439_v24 }
 0x12d   :  { %1256 = vmatprep.subr.mxu0 %v633_v26  ;;  %1230 = vmatprep.subr.mxu1 %v438_v27  ;;  %v415_v48 = vpop.f32.mrf.mxu0 }
 0x12e   :  { %1257 = vmatpush3.msra.mxu0 %v633_v26  ;;  %1231 = vmatpush3.msra.mxu1 %v438_v27 }
 0x12f   :  { %1258 = vmatprep.subr.mxu0 %v632_v28  ;;  %1232 = vmatprep.subr.mxu1 %v437_v29 }
 0x130   :  { %1259 = vmatpush3.msra.mxu0 %v632_v28  ;;  %1233 = vmatpush3.msra.mxu1 %v437_v29  ;;  %v996_v28 = vld [vmem:[%s1810_s11 + $0x38] sm:$0xff]  ;;  %v995_v29 = vld [vmem:[%s1810_s11 + $0x30] sm:$0xff] }
 0x131   :  { %1260 = vmatprep.subr.mxu0 %v631_v30  ;;  %1234 = vmatprep.subr.mxu1 %v436_v32 }
 0x132   :  { %1261 = vmatpush3.msra.mxu0 %v631_v30  ;;  %1235 = vmatpush3.msra.mxu1 %v436_v32  ;;  %v994_v30 = vld [vmem:[%s1810_s11 + $0x28] sm:$0xff]  ;;  %v992_v32 = vld [vmem:[%s1810_s11 + $0x18] sm:$0xff] }
 0x133   :  { %1262 = vmatprep.subr.mxu0 %v630_v31  ;;  %1236 = vmatprep.subr.mxu1 %v435_v34 }
 0x134   :  { %1263 = vmatpush3.msra.mxu0 %v630_v31  ;;  %1237 = vmatpush3.msra.mxu1 %v435_v34  ;;  %v993_v31 = vld [vmem:[%s1810_s11 + $0x20] sm:$0xff]  ;;  %v990_v34 = vld [vmem:[%s1810_s11 + $0x8] sm:$0xff] }
 0x135   :  { %1264 = vmatprep.subr.mxu0 %v629_v33  ;;  %1238 = vmatprep.subr.mxu1 %v434_v36 }
 0x136   :  { %1265 = vmatpush3.msra.mxu0 %v629_v33  ;;  %1239 = vmatpush3.msra.mxu1 %v434_v36  ;;  %v991_v33 = vld [vmem:[%s1810_s11 + $0x10] sm:$0xff]  ;;  %v607_v36 = vsub.s32 1, %v1729_v41 }
 0x137   :  { %1266 = vmatprep.subr.mxu0 %v628_v35  ;;  %1273 = vmatprep.subr.mxu1 %v626_v38 }
 0x138   :  { %1267 = vmatpush3.msra.mxu0 %v628_v35  ;;  %v989_v35 = vld [vmem:[%s1810_s11] sm:$0xff] }
 0x139   :  { %1268 = vmatprep.subr.mxu0 %v627_v37 }
 0x13a   :  { %1269 = vmatpush3.msra.mxu0 %v627_v37 }
 0x13b   :  { %1303 = vmatprep.subr.mxu0 %v806_v39 }
 0x1e7   :  { %v1212_v45 = vpop.f32.mrf.mxu1 }
 0x1e8   :  { %v421_v46 = vadd.f32 %v1223_v42, %v1212_v45 }
 0x1e9   :  { %v334_v49 = vpop.f32.mrf.mxu1 }
 0x1ea   :  { %v416_v50 = vadd.f32 %v415_v48, %v334_v49  ;;  %v1737_v52 = vadd.f32 %v427_v47, %v421_v46  ;;  %v975_v46 = vsub.s32 3, %v1729_v41 }
 0x1eb   :  { %v1253_v3 = vpop.f32.mrf.mxu0 }
 0x1ec   :  { %v1735_v51 = vadd.f32 %v427_v47, %v416_v50 }
 0x1ed   :  { %v596_v5 = vpop.f32.mrf.mxu0 }
 0x1ee   :  { %1240 = vmatprep.mubr.msk.f32.mxu1 %vm442_vm2, %v1735_v51  ;;  %1270 = vmatprep.mubr.msk.f32.mxu0 %vm442_vm2, %v1735_v51 }
 0x1ef   :  { %1241 = vmatmul.mubr.msk.f32.vlgmr.msra.gmra.mxu1 %vm442_vm2, %v1737_v52  ;;  %1271 = vmatmul.mubr.msk.f32.vlgmr.msra.gmra.mxu0 %vm442_vm2, %v1737_v52 }
 0x1f0   :  { %1274 = vmatpush3.msra.mxu1 %v626_v38  ;;  %1304 = vmatpush3.msra.mxu0 %v806_v39  ;;  %v608_v38 = vrot.slane %v1732_v44, %v607_v36 }
 0x1f1   :  { %1275 = vmatprep.subr.mxu1 %v625_v53  ;;  %1281 = vmatprep.mubr.msk.f32.mxu1 %vm261_vm1, %v1687_v25 }
 0x1f2   :  { %1305 = vmatprep.subr.mxu0 %v805_v54  ;;  %1311 = vmatprep.mubr.msk.f32.mxu0 %vm261_vm1, %v1687_v25 }
 0x1f3   :  { %1276 = vmatpush3.msra.mxu1 %v625_v53  ;;  %1306 = vmatpush3.msra.mxu0 %v805_v54  ;;  %v976_v53 = vrot.slane %v1732_v44, %v975_v46 }
 0x1f4   :  { %1277 = vmatprep.subr.mxu1 %v624_v55  ;;  %1307 = vmatprep.subr.mxu0 %v804_v56 }
 0x1f5   :  { %1278 = vmatpush3.msra.mxu1 %v624_v55  ;;  %1308 = vmatpush3.msra.mxu0 %v804_v56 }
 0x1f6   :  { %1279 = vmatprep.subr.mxu1 %v623_v57  ;;  %1309 = vmatprep.subr.mxu0 %v803_v58 }
 0x1f7   :  { %1280 = vmatpush3.msra.mxu1 %v623_v57  ;;  %1310 = vmatpush3.msra.mxu0 %v803_v58 }
 0x1f8   :  { %1282 = vmatmul.mubr.msk.f32.vlgmr.msra.gmra.mxu1 %vm261_vm1, %v1682_v23  ;;  %1312 = vmatmul.mubr.msk.f32.vlgmr.msra.gmra.mxu0 %vm261_vm1, %v1682_v23 }
 0x1f9   :  { %1284 = vmatprep.subr.mxu1 %v816_v59  ;;  %1314 = vmatprep.subr.mxu0 %v996_v28 }
 0x1fa   :  { %1285 = vmatpush3.msra.mxu1 %v816_v59  ;;  %1315 = vmatpush3.msra.mxu0 %v996_v28 }
 0x1fb   :  { %1286 = vmatprep.subr.mxu1 %v815_v60  ;;  %1316 = vmatprep.subr.mxu0 %v995_v29 }
 0x1fc   :  { %1287 = vmatpush3.msra.mxu1 %v815_v60  ;;  %1317 = vmatpush3.msra.mxu0 %v995_v29 }
 0x1fd   :  { %1288 = vmatprep.subr.mxu1 %v814_v61  ;;  %1318 = vmatprep.subr.mxu0 %v994_v30 }
 0x1fe   :  { %1289 = vmatpush3.msra.mxu1 %v814_v61  ;;  %1319 = vmatpush3.msra.mxu0 %v994_v30 }
 0x1ff   :  { %1290 = vmatprep.subr.mxu1 %v813_v62  ;;  %1320 = vmatprep.subr.mxu0 %v993_v31 }
 0x200   :  { %1291 = vmatpush3.msra.mxu1 %v813_v62  ;;  %1321 = vmatpush3.msra.mxu0 %v993_v31 }
 0x201   :  { %1292 = vmatprep.subr.mxu1 %v812_v63  ;;  %1322 = vmatprep.subr.mxu0 %v992_v32 }
 0x202   :  { %1293 = vmatpush3.msra.mxu1 %v812_v63  ;;  %1323 = vmatpush3.msra.mxu0 %v992_v32 }
 0x203   :  { %1294 = vmatprep.subr.mxu1 %v811_v0  ;;  %1324 = vmatprep.subr.mxu0 %v991_v33 }
 0x204   :  { %1295 = vmatpush3.msra.mxu1 %v811_v0  ;;  %1325 = vmatpush3.msra.mxu0 %v991_v33 }
 0x205   :  { %1296 = vmatprep.subr.mxu1 %v810_v1  ;;  %1326 = vmatprep.subr.mxu0 %v990_v34 }
 0x206   :  { %1297 = vmatpush3.msra.mxu1 %v810_v1  ;;  %1327 = vmatpush3.msra.mxu0 %v990_v34 }
 0x207   :  { %1298 = vmatprep.subr.mxu1 %v809_v2  ;;  %1328 = vmatprep.subr.mxu0 %v989_v35 }
 0x208   :  { %1299 = vmatpush3.msra.mxu1 %v809_v2  ;;  %1329 = vmatpush3.msra.mxu0 %v989_v35 }
 0x2af   :  { %v1242_v4 = vpop.f32.mrf.mxu1  ;;  %v1272_v9 = vpop.f32.mrf.mxu0 }
 0x2b0   :  { %v602_v37 = vadd.f32 %v1253_v3, %v1242_v4 }
 0x2b1   :  { %v515_v6 = vpop.f32.mrf.mxu1  ;;  %v701_v13 = vpop.f32.mrf.mxu0 }
 0x2b2   :  { %v597_v7 = vadd.f32 %v596_v5, %v515_v6  ;;  %v610_v39 = vadd.f32 %v608_v38, %v602_v37 }
 0x2b4   :  { %v609_v40 = vadd.f32 %v608_v38, %v597_v7  ;;  %v1103_v42 = vmul.f32 -1.442695, %v610_v39 }
 0x2b6   :  { %v1102_v43 = vmul.f32 -1.442695, %v609_v40 }
 0x2b8   :  { %v1283_v11 = vpop.f32.mrf.mxu1  ;;  %v1313_v49 = vpop.f32.mrf.mxu0 }
 0x2b9   :  { %v782_v12 = vadd.f32 %v1283_v11, %v1272_v9 }
 0x2ba   :  { %v776_v14 = vpop.f32.mrf.mxu1  ;;  %v964_v56 = vpop.f32.mrf.mxu0 }
 0x2bb   :  { %v790_v15 = vadd.f32 %v788_v10, %v782_v12  ;;  %v777_v16 = vadd.f32 %v776_v14, %v701_v13 }
 0x2bd   :  { %v1109_v17 = vmul.f32 -1.442695, %v790_v15  ;;  %v789_v18 = vadd.f32 %v788_v10, %v777_v16 }
 0x2bf   :  { %1343 = vpow2.f32 %v1109_v17  ;;  %v1108_v19 = vmul.f32 -1.442695, %v789_v18 }
 0x2c1   :  { %1345 = vpow2.f32 %v1108_v19 }
 0x2cc   :  { %v1344_v20 = vpop.eup %1343 }
 0x2cd   :  { %v798_v21 = vadd.f32 1.0, %v1344_v20 }
 0x2ce   :  { %v1346_v22 = vpop.eup %1345 }
 0x2cf   :  { %v797_v23 = vadd.f32 1.0, %v1346_v22  ;;  %1347 = vrcp.f32 %v798_v21 }
 0x2d1   :  { %1349 = vrcp.f32 %v797_v23 }
 0x2d2   :  { %1351 = vpow2.f32 %v1103_v42 }
 0x2d3   :  { %1353 = vpow2.f32 %v1102_v43 }
 0x2dc   :  { %v1348_v24 = vpop.eup %1347 }
 0x2dd   :  { %v808_v27 = vmul.f32 %v1348_v24, %v1737_v52 }
 0x2de   :  { %v1350_v25 = vpop.eup %1349 }
 0x2df   :  { %v807_v26 = vmul.f32 %v1350_v25, %v1735_v51  ;;  %v1352_v45 = vpop.eup %1351 }
 0x2e0   :  { %v1354_v47 = vpop.eup %1353  ;;  %v618_v48 = vadd.f32 1.0, %v1352_v45 }
 0x2e1   :  { %1300 = vmatprep.mubr.msk.f32.mxu1 %vm442_vm2, %v807_v26  ;;  %v617_v50 = vadd.f32 1.0, %v1354_v47 }
 0x2e2   :  { %1301 = vmatmul.mubr.msk.f32.vlgmr.msra.gmra.mxu1 %vm442_vm2, %v808_v27  ;;  %1355 = vrcp.f32 %v618_v48 }
 0x2e3   :  { %1357 = vrcp.f32 %v617_v50 }
 0x2ef   :  { %v1356_v61 = vpop.eup %1355 }
 0x2f0   :  { %v1358_v62 = vpop.eup %1357  ;;  %v984_v63 = vsub.f32 1.0, %v1356_v61  ;;  %v982_v4 = vmul.f32 %v1356_v61, %v1737_v52 }
 0x2f1   :  { %v983_v0 = vsub.f32 1.0, %v1358_v62  ;;  %v981_v44 = vmul.f32 %v1358_v62, %v1735_v51 }
 0x3a2   :  { %v1302_v54 = vpop.f32.mrf.mxu1 }
 0x3a3   :  { %v970_v55 = vadd.f32 %v1313_v49, %v1302_v54 }
 0x3a4   :  { %v889_v57 = vpop.f32.mrf.mxu1 }
 0x3a5   :  { %v978_v58 = vadd.f32 %v976_v53, %v970_v55  ;;  %v965_v59 = vadd.f32 %v964_v56, %v889_v57 }
 0x3a7   :  { %1359 = vtanh.f32 %v978_v58  ;;  %v977_v60 = vadd.f32 %v976_v53, %v965_v59 }
 0x3a9   :  { %1361 = vtanh.f32 %v977_v60 }
 0x3b4   :  { %v1360_v41 = vpop.eup %1359 }
 0x3b5   :  { %v986_v2 = vmul.f32 %v1360_v41, %v984_v63 }
 0x3b6   :  { %v1362_v1 = vpop.eup %1361 }
 0x3b7   :  { %v985_v3 = vmul.f32 %v1362_v1, %v983_v0  ;;  %v988_v6 = vadd.f32 %v986_v2, %v982_v4 }
 0x3b9   :  { %v987_v5 = vadd.f32 %v985_v3, %v981_v44 }
 0x3bb   :  { %1330 = vmatprep.mubr.msk.f32.mxu0 %vm442_vm2, %v987_v5 }
 0x3bc   :  { %1331 = vmatmul.mubr.msk.f32.vlgmr.msra.gmra.mxu0 %vm442_vm2, %v988_v6 }
 0x47c   :  { %v1332_v7 = vpop.f32.mrf.mxu0 }
 0x47d   :  { %1080 = vst.msk [vmem:[%s1811_s12 + $0x8] sm:$0xff] %vm1078_vm3, %v1332_v7 }
 0x47e   :  { %v1069_v8 = vpop.f32.mrf.mxu0 }
 0x47f   :  { %1079 = vst.msk [vmem:[%s1811_s12] sm:$0xff] %vm1078_vm3, %v1069_v8 }
 0x480   :  { %1085 = vsyncpa [#allocation3], 1 }
 0x481   :  { %1086 = vsyncpa [#allocation5], 1 }
 0x482   :  { %1087 = vsyncpa [#allocation8], 1 }
 0x483   :  { %1088 = vsyncpa [#allocation11], 1 }
 0x484   :  { %1089 = vsyncpa [#allocation14], 1 }

</bundles_post_ra>
